<compile_context>
chip_gen: v7x
topology: tpu7x:2x2x1
jax: 0.10.0
libtpu: 0.0.40
codegen_flags: <defaults>
</compile_context>

<pallas_src>
import jax
import jax.numpy as jnp
from jax.experimental import pallas as pl
from jax.experimental.pallas import tpu as pltpu

_HIGHEST = jax.lax.Precision.HIGHEST


def _silu(y):
    # SiLU(y) = y * sigmoid(y) = y / (1 + exp(-y)); exp goes to the EUP slot.
    return y / (1.0 + jnp.exp(-y))


def _round_up(x, m):
    return ((x + m - 1) // m) * m


# --------------------------------------------------------------------------
# phi: x -> SiLU(x @ Wphi + bphi)          (n_a, n_f) -> (n_a, n_f)
# --------------------------------------------------------------------------
def _phi_kernel(x_ref, w_ref, b_ref, o_ref):
    y = jnp.dot(x_ref[...], w_ref[...],
                precision=_HIGHEST, preferred_element_type=jnp.float32)
    o_ref[...] = _silu(y + b_ref[...])


def phi_forward(x, w_phi, b_phi):
    """x: (n_a, n_f) float32 -> (n_a, n_f) float32."""
    n_a, n_f = x.shape
    n_a_pad = _round_up(n_a, 8)
    if n_a_pad != n_a:
        x = jnp.pad(x, ((0, n_a_pad - n_a), (0, 0)))
    out = pl.pallas_call(
        _phi_kernel,
        out_shape=jax.ShapeDtypeStruct((n_a_pad, n_f), jnp.float32),
        grid_spec=pltpu.PrefetchScalarGridSpec(
            num_scalar_prefetch=0,
            grid=(1,),
            in_specs=[
                pl.BlockSpec((n_a_pad, n_f), lambda i: (0, 0)),
                pl.BlockSpec((n_f, n_f), lambda i: (0, 0)),
                pl.BlockSpec((1, n_f), lambda i: (0, 0)),
            ],
            out_specs=pl.BlockSpec((n_a_pad, n_f), lambda i: (0, 0)),
        ),
    )(x.astype(jnp.float32), w_phi, b_phi.reshape(1, n_f))
    return out[:n_a]


# --------------------------------------------------------------------------
# Fused CFConv pair kernel: one pad-free M-tile (= d whole atoms) per step.
# --------------------------------------------------------------------------
def _cfconv_kernel(em_ref, xc_ref, xn_ref, w12_ref, b12_ref,
                   woh_ref, wol_ref, bo_ref, s1_ref, s2_ref, s3_ref):
    tm, nk1 = em_ref.shape           # packed [rbf | mask] width = n_k + 1
    d, nf = xc_ref.shape             # d = atoms covered by this tile
    nm = tm // d                     # neighbours per atom
    nk = nk1 - 1
    f32, bf16 = jnp.float32, jnp.bfloat16

    em = em_ref[...]                                   # (tm, nk+1)
    m = em[:, nk:nk + 1]                               # (tm, 1) neighbour mask

    # Filter stage: fused [W1|W2] matmul (mask lane hits a zero weight row),
    # single SiLU over (tm, 2*nf).
    w12 = _silu(jnp.dot(em, w12_ref[...], precision=_HIGHEST,
                        preferred_element_type=f32) + b12_ref[...])

    # Center-atom expansion on the MXU: x_ctr = E @ xc, E one-hot (tm, d)
    # built from iota (row r selects atom r // nm, expressed without integer
    # division).  xc split hi/lo -> two bf16 passes reproduce f32 values.
    rows = jax.lax.broadcasted_iota(jnp.int32, (tm, d), 0)
    cols = jax.lax.broadcasted_iota(jnp.int32, (tm, d), 1) * nm
    expand = ((rows >= cols) & (rows < cols + nm)).astype(f32).astype(bf16)
    xc = xc_ref[...]
    xc_hi = xc.astype(bf16)
    xc_lo = (xc - xc_hi.astype(f32)).astype(bf16)
    x_ctr = (jnp.dot(expand, xc_hi, preferred_element_type=f32)
             + jnp.dot(expand, xc_lo, preferred_element_type=f32))

    v1 = x_ctr * w12[:, :nf] * m                       # (tm, nf)
    v2 = xn_ref[...] * w12[:, nf:] * m                 # (tm, nf)
    v12 = jnp.concatenate([v1, v2], axis=-1)           # (tm, 2*nf), K = 256

    # Output matmul as bf16_3x (~ Precision.HIGH accuracy, half the MXU
    # passes of HIGHEST); w_o arrives pre-split into hi/lo bf16 halves.
    v_hi = v12.astype(bf16)
    v_lo = (v12 - v_hi.astype(f32)).astype(bf16)
    y = (jnp.dot(v_hi, woh_ref[...], preferred_element_type=f32)
         + jnp.dot(v_lo, woh_ref[...], preferred_element_type=f32)
         + jnp.dot(v_hi, wol_ref[...], preferred_element_type=f32))
    v = (y + bo_ref[...]) * m                          # (tm, 3*nf)

    # Three lane-dense 128-wide outputs -> unmasked full-vreg stores.
    s1_ref[...] = v[:, :nf]
    s2_ref[...] = v[:, nf:2 * nf]
    s3_ref[...] = v[:, 2 * nf:]


def _choose_atoms_per_tile(n_a, n_m, target_rows):
    # d atoms per tile: d | n_a (pad-free), and d % 8 == 0 or d == n_a so the
    # (d, n_f) xp block and the (d*n_m, .) pair blocks satisfy the sublane
    # rule (d == n_a means every block equals the full array, also OK).
    feasible = [d for d in range(1, n_a + 1)
                if n_a % d == 0 and (d % 8 == 0 or d == n_a)]
    within = [d for d in feasible if d * n_m <= target_rows]
    return max(within) if within else min(feasible)


def cfconv_forward(x, e, mask, loop_mask, params, *, tile_rows=1024):
    """
    x:         (1, n_a, n_f)        float32
    e:         (1, n_a, n_a-1, n_k) float32
    mask:      (1, n_a, n_a-1, 1)   float32
    loop_mask: (1, n_a, n_a)        bool
    returns (s1, s2, s3), each (1, n_a, n_a-1, n_f)
    """
    _, n_a, n_f = x.shape
    _, _, n_m, n_k = e.shape
    M = n_a * n_m

    # phi(x) — small Pallas matmul, stays resident per-tile in the main kernel.
    xp = phi_forward(x[0].astype(jnp.float32),
                     params["w_phi"], params["b_phi"])          # (n_a, n_f)

    # TODO(synk): neighbour gather (x_rep[loop_mask]) stays as a wrapper-side
    # index precompute + XLA gather (argsort handles any loop_mask with n_m
    # Trues per row; for the canonical off-diagonal mask it equals j + (j>=i)).
    lm = loop_mask[0].astype(bool)                               # (n_a, n_a)
    nbr_idx = jnp.argsort(jnp.logical_not(lm), axis=-1,
                          stable=True)[:, :n_m]                  # (n_a, n_m)
    x_nbs = jnp.take(xp, nbr_idx.reshape(-1), axis=0)            # (M, n_f)

    # Packed [rbf | mask] stream: one (M, n_k+1) input instead of two.
    em = jnp.concatenate(
        [e.reshape(M, n_k).astype(jnp.float32),
         mask.reshape(M, 1).astype(jnp.float32)], axis=-1)       # (M, n_k+1)

    # Pad-free tiling: each tile covers d whole atoms.
    d = _choose_atoms_per_tile(n_a, n_m, tile_rows)
    tm = d * n_m
    n_tiles = M // tm

    # Fused filter weights: [W1|W2] with a zero row absorbing the mask lane.
    w12 = jnp.concatenate([params["w1"], params["w2"]], axis=1)  # (n_k, 2nf)
    w12e = jnp.concatenate(
        [w12, jnp.zeros((1, 2 * n_f), jnp.float32)], axis=0)     # (n_k+1, 2nf)
    b12 = jnp.concatenate([params["b1"], params["b2"]]).reshape(1, 2 * n_f)
    # Output weights pre-split into bf16 hi/lo halves (same bytes as one f32).
    w_o = params["w_o"]                                          # (2nf, 3nf)
    wo_hi = w_o.astype(jnp.bfloat16)
    wo_lo = (w_o - wo_hi.astype(jnp.float32)).astype(jnp.bfloat16)
    b_o = params["b_o"].reshape(1, 3 * n_f)

    def pair_spec(width):
        return pl.BlockSpec((tm, width), lambda i: (i, 0))

    def rep_spec(shape):
        return pl.BlockSpec(shape, lambda i: (0, 0))

    s1, s2, s3 = pl.pallas_call(
        _cfconv_kernel,
        out_shape=(jax.ShapeDtypeStruct((M, n_f), jnp.float32),) * 3,
        grid_spec=pltpu.PrefetchScalarGridSpec(
            num_scalar_prefetch=0,
            grid=(n_tiles,),
            in_specs=[
                pair_spec(n_k + 1),              # [e | mask]
                pl.BlockSpec((d, n_f), lambda i: (i, 0)),   # phi(x), d atoms
                pair_spec(n_f),                  # neighbour features
                rep_spec((n_k + 1, 2 * n_f)),    # fused [W1|W2] (+ zero row)
                rep_spec((1, 2 * n_f)),          # [b1|b2]
                rep_spec((2 * n_f, 3 * n_f)),    # w_o (bf16 hi)
                rep_spec((2 * n_f, 3 * n_f)),    # w_o (bf16 lo)
                rep_spec((1, 3 * n_f)),          # b_o
            ],
            out_specs=(pl.BlockSpec((tm, n_f), lambda i: (i, 0)),
                       pl.BlockSpec((tm, n_f), lambda i: (i, 0)),
                       pl.BlockSpec((tm, n_f), lambda i: (i, 0))),
        ),
        compiler_params=pltpu.CompilerParams(
            dimension_semantics=("parallel",),
            vmem_limit_bytes=32 * 1024 * 1024),
    )(em, xp, x_nbs, w12e, b12, wo_hi, wo_lo, b_o)

    shape = (1, n_a, n_m, n_f)
    return s1.reshape(shape), s2.reshape(shape), s3.reshape(shape)


# --------------------------------------------------------------------------
# Parameters (weights stored as (in, out) so kernels do x @ W directly).
# --------------------------------------------------------------------------
def cfconv_init_params(key, n_kernel=20, n_feature=128):
    k1, k2, k3, k4, k5, k6, k7, k8 = jax.random.split(key, 8)
    lim12 = (6.0 / n_kernel) ** 0.5
    w1 = jax.random.uniform(k1, (n_kernel, n_feature), jnp.float32, -lim12, lim12)
    w2 = jax.random.uniform(k2, (n_kernel, n_feature), jnp.float32, -lim12, lim12)
    bk = 1.0 / n_kernel ** 0.5
    b1 = jax.random.uniform(k3, (n_feature,), jnp.float32, -bk, bk)
    b2 = jax.random.uniform(k4, (n_feature,), jnp.float32, -bk, bk)
    w_phi = (0.5 * (6.0 / n_feature) ** 0.5) * jax.random.normal(
        k5, (n_feature, n_feature), jnp.float32)
    bf = 1.0 / n_feature ** 0.5
    b_phi = jax.random.uniform(k6, (n_feature,), jnp.float32, -bf, bf)
    lo = 1.0 / (2 * n_feature) ** 0.5
    w_o = jax.random.uniform(k7, (2 * n_feature, 3 * n_feature), jnp.float32, -lo, lo)
    b_o = jax.random.uniform(k8, (3 * n_feature,), jnp.float32, -lo, lo)
    return dict(w1=w1, b1=b1, w2=w2, b2=b2,
                w_phi=w_phi, b_phi=b_phi, w_o=w_o, b_o=b_o)


# --------------------------------------------------------------------------
# Pure-JAX reference mirroring the PyTorch forward exactly.
# --------------------------------------------------------------------------
def cfconv_reference(x, e, mask, loop_mask, p):
    w1 = _silu(jnp.dot(e, p["w1"], precision=_HIGHEST) + p["b1"])
    w2 = _silu(jnp.dot(e, p["w2"], precision=_HIGHEST) + p["b2"])
    xp = _silu(jnp.dot(x, p["w_phi"], precision=_HIGHEST) + p["b_phi"])
    _, n_a, f = x.shape
    x_rep = jnp.broadcast_to(xp[:, None, :, :], (1, n_a, n_a, f))
    lm = loop_mask.astype(bool)
    x_nbs = x_rep[lm].reshape(1, n_a, n_a - 1, f)       # boolean-mask gather
    v1 = xp[:, :, None, :] * w1 * mask
    v2 = x_nbs * w2 * mask
    v = (jnp.dot(jnp.concatenate([v1, v2], axis=-1), p["w_o"],
                 precision=_HIGHEST) + p["b_o"]) * mask
    s1, s2, s3 = jnp.split(v, 3, axis=-1)
    return s1, s2, s3


if __name__ == "__main__":
    n_a, n_f, n_k = 8, 128, 20
    key = jax.random.PRNGKey(0)
    kx, ke, km, kp = jax.random.split(key, 4)

    x = jax.random.normal(kx, (1, n_a, n_f), dtype=jnp.float32)
    e = jax.random.uniform(ke, (1, n_a, n_a - 1, n_k), dtype=jnp.float32)
    mask = (jax.random.uniform(km, (1, n_a, n_a - 1, 1)) > 0.2).astype(jnp.float32)
    loop_mask = jnp.logical_not(jnp.eye(n_a, dtype=bool))[None]   # (1, n_a, n_a)

    params = cfconv_init_params(kp, n_k, n_f)

    s1, s2, s3 = cfconv_forward(x, e, mask, loop_mask, params)
    s1, s2, s3 = jax.block_until_ready((s1, s2, s3))

    r1, r2, r3 = cfconv_reference(x, e, mask, loop_mask, params)

    assert s1.shape == (1, n_a, n_a - 1, n_f)
    assert s2.shape == (1, n_a, n_a - 1, n_f)
    assert s3.shape == (1, n_a, n_a - 1, n_f)
    for got, ref in ((s1, r1), (s2, r2), (s3, r3)):
        err = float(jnp.max(jnp.abs(got - ref)))
        assert jnp.allclose(got, ref, atol=2e-4, rtol=1e-3), f"mismatch {err}"

    print("KERNEL_OK")
</pallas_src>

<mosaic_0001>
module attributes {stable_mosaic.version = 11 : i64} {
  func.func @_phi_kernel(%arg0: i32, %arg1: memref<8x128xf32, #tpu.memory_space<vmem>>, %arg2: memref<128x128xf32, #tpu.memory_space<vmem>>, %arg3: memref<1x128xf32, #tpu.memory_space<vmem>>, %arg4: memref<8x128xf32, #tpu.memory_space<vmem>>) attributes {dimension_semantics = [#tpu.dimension_semantics<arbitrary>], iteration_bounds = array<i64: 1>, scalar_prefetch = 0 : i64, scratch_operands = 0 : i64, tpu.core_type = #tpu.core_type<tc>, window_params = [{pipeline_mode = #tpu.pipeline_mode<synchronous>, transform_indices = @transform_0, window_bounds = array<i64: 8, 128>}, {pipeline_mode = #tpu.pipeline_mode<synchronous>, transform_indices = @transform_1, window_bounds = array<i64: 128, 128>}, {pipeline_mode = #tpu.pipeline_mode<synchronous>, transform_indices = @transform_2, window_bounds = array<i64: 1, 128>}, {pipeline_mode = #tpu.pipeline_mode<synchronous>, transform_indices = @transform_3, window_bounds = array<i64: 8, 128>}]} {
    %c0 = arith.constant 0 : index
    %c0_0 = arith.constant 0 : index
    %0 = vector.load %arg1[%c0, %c0_0] : memref<8x128xf32, #tpu.memory_space<vmem>>, vector<8x128xf32>
    %c0_1 = arith.constant 0 : index
    %c0_2 = arith.constant 0 : index
    %1 = vector.load %arg2[%c0_1, %c0_2] : memref<128x128xf32, #tpu.memory_space<vmem>>, vector<128x128xf32>
    %cst = arith.constant dense<0.000000e+00> : vector<8x128xf32>
    %2 = tpu.matmul %0, %1, %cst {dimension_numbers = #tpu.dot_dimension_numbers<[1], [0], [0], [1], [0, 0, 1, 1], [], []>, precision = #tpu.contract_precision<fp32>} : vector<8x128xf32>, vector<128x128xf32>, vector<8x128xf32> -> vector<8x128xf32>
    %c0_3 = arith.constant 0 : index
    %c0_4 = arith.constant 0 : index
    %3 = vector.load %arg3[%c0_3, %c0_4] : memref<1x128xf32, #tpu.memory_space<vmem>>, vector<1x128xf32>
    %4 = vector.broadcast %3 : vector<1x128xf32> to vector<8x128xf32>
    %5 = arith.addf %2, %4 : vector<8x128xf32>
    %cst_5 = arith.constant 0.000000e+00 : f32
    %6 = vector.broadcast %cst_5 : f32 to vector<8x128xf32>
    %7 = arith.subf %6, %5 : vector<8x128xf32>
    %8 = math.exp %7 : vector<8x128xf32>
    %cst_6 = arith.constant 1.000000e+00 : f32
    %9 = vector.broadcast %cst_6 : f32 to vector<8x128xf32>
    %10 = arith.addf %9, %8 : vector<8x128xf32>
    %11 = arith.divf %5, %10 : vector<8x128xf32>
    %c0_7 = arith.constant 0 : index
    %c0_8 = arith.constant 0 : index
    %12 = vector.load %arg4[%c0_7, %c0_8] : memref<8x128xf32, #tpu.memory_space<vmem>>, vector<8x128xf32>
    tpu.vector_store %arg4[%c0_7, %c0_8], %11 {strides = array<i32>} : memref<8x128xf32, #tpu.memory_space<vmem>>, vector<8x128xf32>,
    return
  }
  func.func @transform_0(%arg0: i32) -> (i32, i32) {
    %c0_i32 = arith.constant 0 : i32
    %c0_i32_0 = arith.constant 0 : i32
    %c0_i32_1 = arith.constant 0 : i32
    return %c0_i32, %c0_i32_0 : i32, i32
  }
  func.func @transform_1(%arg0: i32) -> (i32, i32) {
    %c0_i32 = arith.constant 0 : i32
    %c0_i32_0 = arith.constant 0 : i32
    %c0_i32_1 = arith.constant 0 : i32
    return %c0_i32, %c0_i32_0 : i32, i32
  }
  func.func @transform_2(%arg0: i32) -> (i32, i32) {
    %c0_i32 = arith.constant 0 : i32
    %c0_i32_0 = arith.constant 0 : i32
    %c0_i32_1 = arith.constant 0 : i32
    return %c0_i32, %c0_i32_0 : i32, i32
  }
  func.func @transform_3(%arg0: i32) -> (i32, i32) {
    %c0_i32 = arith.constant 0 : i32
    %c0_i32_0 = arith.constant 0 : i32
    %c0_i32_1 = arith.constant 0 : i32
    return %c0_i32, %c0_i32_0 : i32, i32
  }
}

</mosaic_0001>

<bundles_post_ra>
// kernel: tpu_custom_call.1
= control target key start
LH: loop header
LB: loop body
LE: loop exit
PB: predicated region body
PF: predicated region fallthrough
CT: control target
= control target key end

     0   :  { %8 = vsyncpa [#allocation3], 0  ;;  %s1601_s0 = inlined_call_operand.hbm [shape: f32[8,128], index: 0, kind: input, shape index: {}]   ;;  %s1602_s1 = inlined_call_operand.hbm [shape: f32[128,128], index: 1, kind: input, shape index: {}]   ;;  %s1603_s2 = inlined_call_operand.vmem [shape: f32[1,128], index: 2, kind: input, shape index: {}]   ;;  %s1604_s3 = inlined_call_operand.hbm [shape: f32[8,128], index: 3, kind: output, shape index: {}]  }
   0x1   :  { %9 = vsyncpa [#allocation6], 0 }
   0x2   :  { %10 = vsyncpa [#allocation4], 0  ;;  %s1280_s12 = smov [#allocation2]   ;;  %s1281_s14 = smov [#allocation5]  }
   0x3   :  { %s17_s13 = sshll.u32 %s1280_s12, 4  ;;  %s26_s15 = sshll.u32 %s1281_s14, 4  ;;  %s18_s13 = int_to_ptr.vmem [resolvable:$true] %s17_s13  ;;  %s1308_s15 = int_to_ptr.vmem [resolvable:$true] %s26_s15 }
   0x4   :  { %s1208_s18 = scalar_lea.hbm %s1601_s0, 128 }
   0x5   :  { %p1209_p0 = scmp.ne.s32.totalorder %s1601_s0, %s1208_s18  ;;  %p1212_p1 = scmp.lt.u32.totalorder %s1208_s18, %s1601_s0 }
   0x7   :  { %p1214_p2 = pnand %p1212_p1, %p1209_p0 }
   0x9   :  { %1217 = shalt.err (!%p1214_p2)
}
   0xa   :  { %s1218_s23 = scalar_lea.vmem %s18_s13, 128  ;;  %p1223_p4 = scmp.lt.s32.totalorder %s18_s13, %s18_s13 }
   0xb   :  { %p1219_p3 = scmp.ne.s32.totalorder %s18_s13, %s1218_s23  ;;  %p1224_p5 = scmp.lt.s32.totalorder %s1218_s23, %s1218_s23 }
   0xd   :  { %p1225_p6 = por %p1224_p5, %p1223_p4 }
   0xf   :  { %p1226_p7 = pnand %p1225_p6, %p1219_p3 }
  0x11   :  { %1229 = shalt.err (!%p1226_p7)
}
  0x12   :  { %20 = dma.hbm_to_vmem [thread:$0]  %s1601_s0, 128, %s18_s13, [#allocation3]  }
  0x13   :  { %s1230_s28 = scalar_lea.hbm %s1602_s1, 2048 }
  0x14   :  { %p1231_p8 = scmp.ne.s32.totalorder %s1602_s1, %s1230_s28  ;;  %p1234_p9 = scmp.lt.u32.totalorder %s1230_s28, %s1602_s1 }
  0x16   :  { %p1236_p10 = pnand %p1234_p9, %p1231_p8 }
  0x18   :  { %1239 = shalt.err (!%p1236_p10)
}
  0x19   :  { %s1240_s6 = scalar_lea.vmem %s1308_s15, 2048  ;;  %p1245_p12 = scmp.lt.s32.totalorder %s1308_s15, %s1308_s15 }
  0x1a   :  { %p1241_p11 = scmp.ne.s32.totalorder %s1308_s15, %s1240_s6  ;;  %p1246_p13 = scmp.lt.s32.totalorder %s1240_s6, %s1240_s6 }
  0x1c   :  { %p1247_p0 = por %p1246_p13, %p1245_p12 }
  0x1e   :  { %p1248_p1 = pnand %p1247_p0, %p1241_p11 }
  0x20   :  { %1251 = shalt.err (!%p1248_p1)
}
  0x21   :  { %s1282_s0 = smov 128   ;;  %s1283_s7 = smov 8  }
  0x22   :  { %32 = dma.hbm_to_vmem [thread:$0]  %s1602_s1, 2048, %s1308_s15, [#allocation6], %s1282_s0, %s1282_s0, %s1283_s7  }
  0x23   :  { %1274 = dma.done.wait [#allocation3], 128  }
  0x24   :  { %1275 = vsyncadd [#allocation3], 4294967168 }
  0x25   :  { %1276 = dma.done.wait [#allocation6], 2048  }
  0x26   :  { %1277 = vsyncadd [#allocation6], 4294965248  ;;  %v1284_v0 = vmov 0.0|0.0   ;;  %vm1285_vm0 = vmmov 0   ;;  %v1286_v1 = vmov 0.0   ;;  %v42_v2 = vld [vmem:[#allocation5] sm:$0xff] }
  0x27   :  { %1042 = vmatprep.subr.bf16.mxu1 %v1284_v0  ;;  %1114 = vmatprep.subr.bf16.mxu0 %v1284_v0  ;;  %v43_v3 = vld [vmem:[#allocation5 + $0x8] sm:$0xff]  ;;  %v44_v4 = vld [vmem:[#allocation5 + $0x10] sm:$0xff]  ;;  %v66_v5 = vand.u32 4294901760, %v42_v2  ;;  %v45_v7 = vld [vmem:[#allocation5 + $0x18] sm:$0xff]  ;;  %s1287_s11 = smov [#allocation7]  }
  0x28   :  { %864 = vmatprep.mubr.msk.f32.mxu1 %vm1285_vm0, %v1286_v1  ;;  %969 = vmatprep.mubr.msk.f32.mxu0 %vm1285_vm0, %v1286_v1  ;;  %v69_v6 = vand.u32 4294901760, %v43_v3  ;;  %v72_v8 = vand.u32 4294901760, %v44_v4  ;;  %v75_v9 = vand.u32 4294901760, %v45_v7  ;;  %v46_v10 = vld [vmem:[#allocation5 + $0x20] sm:$0xff]  ;;  %v47_v11 = vld [vmem:[#allocation5 + $0x28] sm:$0xff]  ;;  %v48_v16 = vld [vmem:[#allocation5 + $0x30] sm:$0xff] }
  0x29   :  { %v78_v14 = vand.u32 4294901760, %v46_v10  ;;  %v81_v15 = vand.u32 4294901760, %v47_v11  ;;  %v49_v17 = vld [vmem:[#allocation5 + $0x38] sm:$0xff]  ;;  %v84_v19 = vand.u32 4294901760, %v48_v16  ;;  %v1359_v21 = vld [vmem:[#allocation5 + $0x40] sm:$0xff]  ;;  %v1361_v22 = vld [vmem:[#allocation5 + $0x48] sm:$0xff]  ;;  %v1375_v29 = vsub.f32 %v42_v2, %v66_v5 }
  0x2a   :  { %v1345_v12 = vpack.c.bf16 %v69_v6, %v66_v5  ;;  %v1349_v13 = vpack.c.bf16 %v75_v9, %v72_v8  ;;  %v87_v20 = vand.u32 4294901760, %v49_v17  ;;  %v90_v24 = vand.u32 4294901760, %v1359_v21  ;;  %v41_v26 = vld [vmem:[#allocation2] sm:$0xff]  ;;  %v1371_v27 = vld [vmem:[#allocation5 + $0x50] sm:$0xff]  ;;  %v1387_v35 = vld [vmem:[#allocation5 + $0x60] sm:$0xff]  ;;  %s719_s12 = sshll.u32 %s1287_s11, 4  ;;  %s720_s12 = int_to_ptr.vmem [resolvable:$true] %s719_s12 }
  0x2b   :  { %v1355_v18 = vpack.c.bf16 %v81_v15, %v78_v14  ;;  %v93_v25 = vand.u32 4294901760, %v1361_v22  ;;  %v1373_v28 = vld [vmem:[#allocation5 + $0x58] sm:$0xff]  ;;  %v1377_v30 = vand.u32 4294901760, %v41_v26  ;;  %v1379_v31 = vsub.f32 %v43_v3, %v69_v6  ;;  %v1391_v36 = vld [vmem:[#allocation5 + $0x68] sm:$0xff]  ;;  %v1410_v43 = vld [vmem:[#allocation5 + $0x70] sm:$0xff]  ;;  %s1252_s13 = scalar_lea.vmem %s720_s12, 128  ;;  %p1257_p3 = scmp.lt.s32.totalorder %s720_s12, %s720_s12 }
  0x2c   :  { %1044 = vmatpush3.bf16.msra.mxu1 %v1345_v12  ;;  %1116 = vmatpush3.bf16.msra.mxu0 %v1345_v12  ;;  %v1365_v23 = vpack.c.bf16 %v87_v20, %v84_v19  ;;  %v96_v33 = vand.u32 4294901760, %v1371_v27  ;;  %v99_v34 = vand.u32 4294901760, %v1373_v28  ;;  %v1393_v37 = vsub.f32 %v44_v4, %v72_v8  ;;  %v1412_v44 = vld [vmem:[#allocation5 + $0x78] sm:$0xff]  ;;  %p1253_p2 = scmp.ne.s32.totalorder %s720_s12, %s1252_s13  ;;  %p1258_p4 = scmp.lt.s32.totalorder %s1252_s13, %s1252_s13 }
  0x2d   :  { %1045 = vmatprep.subr.bf16.mxu1 %v1284_v0  ;;  %1117 = vmatprep.subr.bf16.mxu0 %v1284_v0  ;;  %v1383_v32 = vpack.c.bf16 %v93_v25, %v90_v24  ;;  %v1395_v38 = vsub.f32 %v45_v7, %v75_v9  ;;  %v102_v39 = vand.u32 4294901760, %v1387_v35  ;;  %v1399_v40 = vsub.f32 %v41_v26, %v1377_v30 }
  0x2e   :  { %v1407_v41 = vpack.c.bf16 %v99_v34, %v96_v33  ;;  %v105_v42 = vand.u32 4294901760, %v1391_v36  ;;  %v159_v45 = vand.u32 4294901760, %v1375_v29  ;;  %v166_v46 = vand.u32 4294901760, %v1379_v31  ;;  %p1259_p5 = por %p1258_p4, %p1257_p3 }
  0x2f   :  { %v1418_v47 = vsub.f32 %v46_v10, %v78_v14  ;;  %v1420_v48 = vsub.f32 %v47_v11, %v81_v15  ;;  %v108_v49 = vand.u32 4294901760, %v1410_v43  ;;  %v111_v50 = vand.u32 4294901760, %v1412_v44 }
  0x30   :  { %1047 = vmatpush3.bf16.msra.mxu1 %v1349_v13  ;;  %1119 = vmatpush3.bf16.msra.mxu0 %v1349_v13  ;;  %v148_v51 = vand.u32 4294901760, %v1399_v40  ;;  %v173_v52 = vand.u32 4294901760, %v1393_v37  ;;  %v1432_v53 = vpack.c.bf16 %v105_v42, %v102_v39  ;;  %v160_v54 = vsub.f32 %v1375_v29, %v159_v45  ;;  %p1260_p6 = pnand %p1259_p5, %p1253_p2 }
  0x31   :  { %1048 = vmatprep.subr.bf16.mxu1 %v1284_v0  ;;  %1120 = vmatprep.subr.bf16.mxu0 %v1284_v0  ;;  %v167_v55 = vsub.f32 %v1379_v31, %v166_v46  ;;  %v180_v56 = vand.u32 4294901760, %v1395_v38  ;;  %v1439_v57 = vsub.f32 %v48_v16, %v84_v19  ;;  %v1441_v58 = vsub.f32 %v49_v17, %v87_v20 }
  0x32   :  { %v149_v59 = vsub.f32 %v1399_v40, %v148_v51  ;;  %v174_v60 = vsub.f32 %v1393_v37, %v173_v52  ;;  %v187_v61 = vand.u32 4294901760, %v1418_v47  ;;  %v194_v62 = vand.u32 4294901760, %v1420_v48 }
  0x33   :  { %v1453_v63 = vpack.c.bf16 %v111_v50, %v108_v49  ;;  %v161_v2 = vand.u32 4294901760, %v160_v54  ;;  %v168_v3 = vand.u32 4294901760, %v167_v55  ;;  %v181_v4 = vsub.f32 %v1395_v38, %v180_v56 }
  0x34   :  { %1050 = vmatpush3.bf16.msra.mxu1 %v1355_v18  ;;  %1122 = vmatpush3.bf16.msra.mxu0 %v1355_v18  ;;  %v1459_v5 = vsub.f32 %v1359_v21, %v90_v24  ;;  %v1462_v6 = vsub.f32 %v1361_v22, %v93_v25  ;;  %v1139_v7 = vpack.c.bf16 %v166_v46, %v159_v45  ;;  %v150_v8 = vand.u32 4294901760, %v149_v59 }
  0x35   :  { %1051 = vmatprep.subr.bf16.mxu1 %v1284_v0  ;;  %1123 = vmatprep.subr.bf16.mxu0 %v1284_v0  ;;  %v175_v9 = vand.u32 4294901760, %v174_v60  ;;  %v188_v10 = vsub.f32 %v1418_v47, %v187_v61  ;;  %v195_v11 = vsub.f32 %v1420_v48, %v194_v62  ;;  %v1067_v14 = vpack.c.bf16 %v168_v3, %v161_v2 }
  0x36   :  { %v182_v15 = vand.u32 4294901760, %v181_v4  ;;  %v201_v16 = vand.u32 4294901760, %v1439_v57  ;;  %v208_v17 = vand.u32 4294901760, %v1441_v58  ;;  %v1475_v19 = vsub.f32 %v1371_v27, %v96_v33 }
  0x37   :  { %v1480_v20 = vsub.f32 %v1373_v28, %v99_v34  ;;  %v1142_v21 = vpack.c.bf16 %v180_v56, %v173_v52  ;;  %v189_v22 = vand.u32 4294901760, %v188_v10  ;;  %v196_v24 = vand.u32 4294901760, %v195_v11 }
  0x38   :  { %1053 = vmatpush3.bf16.msra.mxu1 %v1365_v23  ;;  %1125 = vmatpush3.bf16.msra.mxu0 %v1365_v23  ;;  %v215_v25 = vand.u32 4294901760, %v1459_v5  ;;  %v1070_v26 = vpack.c.bf16 %v182_v15, %v175_v9  ;;  %v202_v45 = vsub.f32 %v1439_v57, %v201_v16  ;;  %v209_v27 = vsub.f32 %v1441_v58, %v208_v17 }
  0x39   :  { %1054 = vmatprep.subr.bf16.mxu1 %v1284_v0  ;;  %1126 = vmatprep.subr.bf16.mxu0 %v1284_v0  ;;  %v222_v33 = vand.u32 4294901760, %v1462_v6  ;;  %v1491_v28 = vsub.f32 %v1387_v35, %v102_v39  ;;  %v1496_v34 = vsub.f32 %v1391_v36, %v105_v42  ;;  %v1073_v46 = vpack.c.bf16 %v196_v24, %v189_v22 }
  0x3a   :  { %v216_v52 = vsub.f32 %v1459_v5, %v215_v25  ;;  %v229_v54 = vand.u32 4294901760, %v1475_v19  ;;  %v203_v35 = vand.u32 4294901760, %v202_v45  ;;  %v210_v39 = vand.u32 4294901760, %v209_v27 }
  0x3b   :  { %v223_v55 = vsub.f32 %v1462_v6, %v222_v33  ;;  %v236_v36 = vand.u32 4294901760, %v1480_v20  ;;  %v1511_v42 = vsub.f32 %v1410_v43, %v108_v49  ;;  %v1516_v56 = vsub.f32 %v1412_v44, %v111_v50 }
  0x3c   :  { %1056 = vmatpush3.bf16.msra.mxu1 %v1383_v32  ;;  %1128 = vmatpush3.bf16.msra.mxu0 %v1383_v32  ;;  %v1148_v59 = vpack.c.bf16 %v208_v17, %v201_v16  ;;  %v217_v60 = vand.u32 4294901760, %v216_v52  ;;  %v1076_v2 = vpack.c.bf16 %v210_v39, %v203_v35  ;;  %v250_v43 = vand.u32 4294901760, %v1496_v34 }
  0x3d   :  { %1057 = vmatprep.subr.bf16.mxu1 %v1284_v0  ;;  %1129 = vmatprep.subr.bf16.mxu0 %v1284_v0  ;;  %v224_v3 = vand.u32 4294901760, %v223_v55  ;;  %v237_v4 = vsub.f32 %v1480_v20, %v236_v36  ;;  %v1151_v44 = vpack.c.bf16 %v222_v33, %v215_v25  ;;  %v264_v11 = vand.u32 4294901760, %v1516_v56 }
  0x3e   :  { %v251_v10 = vsub.f32 %v1496_v34, %v250_v43 }
  0x3f   :  { %v238_v9 = vand.u32 4294901760, %v237_v4  ;;  %v265_v22 = vsub.f32 %v1516_v56, %v264_v11 }
  0x40   :  { %1059 = vmatpush3.bf16.msra.mxu1 %v1407_v41  ;;  %1131 = vmatpush3.bf16.msra.mxu0 %v1407_v41  ;;  %v252_v17 = vand.u32 4294901760, %v251_v10 }
  0x41   :  { %1060 = vmatprep.subr.bf16.mxu1 %v1284_v0  ;;  %1132 = vmatprep.subr.bf16.mxu0 %v1284_v0  ;;  %v266_v45 = vand.u32 4294901760, %v265_v22 }
  0x44   :  { %1062 = vmatpush3.bf16.msra.mxu1 %v1432_v53  ;;  %1134 = vmatpush3.bf16.msra.mxu0 %v1432_v53 }
  0x45   :  { %1063 = vmatprep.subr.bf16.mxu1 %v1284_v0  ;;  %1135 = vmatprep.subr.bf16.mxu0 %v1284_v0 }
  0x48   :  { %1065 = vmatpush3.bf16.msra.mxu1 %v1453_v63  ;;  %1137 = vmatpush3.bf16.msra.mxu0 %v1453_v63 }
  0x49   :  { %1066 = vmatprep.subr.bf16.mxu1 %v1284_v0  ;;  %1138 = vmatprep.subr.bf16.mxu0 %v1284_v0 }
  0x4b   :  { %865 = vmatmul.mubr.f32.vlgmr.msra.gmra.mrb[0].mxu1 %v150_v8  ;;  %970 = vmatmul.mubr.f32.vlgmr.msra.gmra.mrb[0].mxu0 %v148_v51  ;;  %v1145_v51 = vpack.c.bf16 %v194_v62, %v187_v61  ;;  %v230_v61 = vsub.f32 %v1475_v19, %v229_v54  ;;  %v243_v62 = vand.u32 4294901760, %v1491_v28  ;;  %v1079_v8 = vpack.c.bf16 %v224_v3, %v217_v60 }
  0x4c   :  { %1068 = vmatpush3.bf16.msra.mxu1 %v1067_v14  ;;  %1140 = vmatpush3.bf16.msra.mxu0 %v1139_v7  ;;  %v257_v7 = vand.u32 4294901760, %v1511_v42  ;;  %v1154_v14 = vpack.c.bf16 %v236_v36, %v229_v54 }
  0x4d   :  { %1069 = vmatprep.subr.bf16.mxu1 %v1284_v0  ;;  %1141 = vmatprep.subr.bf16.mxu0 %v1284_v0  ;;  %v231_v49 = vand.u32 4294901760, %v230_v61  ;;  %v244_v50 = vsub.f32 %v1491_v28, %v243_v62  ;;  %v1157_v25 = vpack.c.bf16 %v250_v43, %v243_v62 }
  0x4e   :  { %899 = vmatprep.mubr.msk.f32.mxu1 %vm1285_vm0, %v1286_v1  ;;  %1004 = vmatprep.mubr.msk.f32.mxu0 %vm1285_vm0, %v1286_v1  ;;  %v1160_v33 = vpack.c.bf16 %v264_v11, %v257_v7 }
  0x4f   :  { %v245_v15 = vand.u32 4294901760, %v244_v50  ;;  %v1082_v16 = vpack.c.bf16 %v238_v9, %v231_v49 }
  0x50   :  { %1071 = vmatpush3.bf16.msra.mxu1 %v1070_v26  ;;  %1143 = vmatpush3.bf16.msra.mxu0 %v1142_v21  ;;  %v258_v21 = vsub.f32 %v1511_v42, %v257_v7 }
  0x51   :  { %1072 = vmatprep.subr.bf16.mxu1 %v1284_v0  ;;  %1144 = vmatprep.subr.bf16.mxu0 %v1284_v0  ;;  %v1085_v24 = vpack.c.bf16 %v252_v17, %v245_v15 }
  0x52   :  { %v259_v26 = vand.u32 4294901760, %v258_v21 }
  0x54   :  { %1074 = vmatpush3.bf16.msra.mxu1 %v1073_v46  ;;  %1146 = vmatpush3.bf16.msra.mxu0 %v1145_v51  ;;  %v1088_v27 = vpack.c.bf16 %v266_v45, %v259_v26  ;;  %v1091_v46 = vpack.c.bf16 %v1379_v31, %v1375_v29  ;;  %v1094_v51 = vpack.c.bf16 %v1395_v38, %v1393_v37  ;;  %v729_v31 = vld [vmem:[%s1603_s2] ss:$0 sm:$0xff] }
  0x55   :  { %1075 = vmatprep.subr.bf16.mxu1 %v1284_v0  ;;  %1147 = vmatprep.subr.bf16.mxu0 %v1284_v0  ;;  %v1097_v29 = vpack.c.bf16 %v1420_v48, %v1418_v47 }
  0x58   :  { %1077 = vmatpush3.bf16.msra.mxu1 %v1076_v2  ;;  %1149 = vmatpush3.bf16.msra.mxu0 %v1148_v59 }
  0x59   :  { %1078 = vmatprep.subr.bf16.mxu1 %v1284_v0  ;;  %1150 = vmatprep.subr.bf16.mxu0 %v1284_v0 }
  0x5c   :  { %1080 = vmatpush3.bf16.msra.mxu1 %v1079_v8  ;;  %1152 = vmatpush3.bf16.msra.mxu0 %v1151_v44 }
  0x5d   :  { %1081 = vmatprep.subr.bf16.mxu1 %v1284_v0  ;;  %1153 = vmatprep.subr.bf16.mxu0 %v1284_v0 }
  0x60   :  { %1083 = vmatpush3.bf16.msra.mxu1 %v1082_v16  ;;  %1155 = vmatpush3.bf16.msra.mxu0 %v1154_v14 }
  0x61   :  { %1084 = vmatprep.subr.bf16.mxu1 %v1284_v0  ;;  %1156 = vmatprep.subr.bf16.mxu0 %v1284_v0 }
  0x64   :  { %1086 = vmatpush3.bf16.msra.mxu1 %v1085_v24  ;;  %1158 = vmatpush3.bf16.msra.mxu0 %v1157_v25 }
  0x65   :  { %1087 = vmatprep.subr.bf16.mxu1 %v1284_v0  ;;  %1159 = vmatprep.subr.bf16.mxu0 %v1284_v0 }
  0x68   :  { %1089 = vmatpush3.bf16.msra.mxu1 %v1088_v27  ;;  %1161 = vmatpush3.bf16.msra.mxu0 %v1160_v33 }
  0x69   :  { %1090 = vmatprep.subr.bf16.mxu1 %v1284_v0  ;;  %1162 = vmatprep.subr.bf16.mxu0 %v1284_v0 }
  0x6b   :  { %900 = vmatmul.mubr.f32.vlgmr.msra.gmra.mrb[0].mxu1 %v1377_v30  ;;  %1005 = vmatmul.mubr.f32.vlgmr.msra.gmra.mrb[0].mxu0 %v1377_v30 }
  0x6c   :  { %1092 = vmatpush3.bf16.msra.mxu1 %v1091_v46  ;;  %1164 = vmatpush3.bf16.msra.mxu0 %v1345_v12  ;;  %v1100_v12 = vpack.c.bf16 %v1441_v58, %v1439_v57 }
  0x6d   :  { %1093 = vmatprep.subr.bf16.mxu1 %v1284_v0  ;;  %1165 = vmatprep.subr.bf16.mxu0 %v1284_v0 }
  0x6e   :  { %934 = vmatprep.mubr.msk.f32.mxu1 %vm1285_vm0, %v1286_v1  ;;  %1039 = vmatprep.mubr.msk.f32.mxu0 %vm1285_vm0, %v1286_v1  ;;  %v1103_v1 = vpack.c.bf16 %v1462_v6, %v1459_v5 }
  0x70   :  { %1095 = vmatpush3.bf16.msra.mxu1 %v1094_v51  ;;  %1167 = vmatpush3.bf16.msra.mxu0 %v1349_v13  ;;  %v1106_v13 = vpack.c.bf16 %v1480_v20, %v1475_v19 }
  0x71   :  { %1096 = vmatprep.subr.bf16.mxu1 %v1284_v0  ;;  %1168 = vmatprep.subr.bf16.mxu0 %v1284_v0 }
  0x74   :  { %1098 = vmatpush3.bf16.msra.mxu1 %v1097_v29  ;;  %1170 = vmatpush3.bf16.msra.mxu0 %v1355_v18  ;;  %v1109_v18 = vpack.c.bf16 %v1496_v34, %v1491_v28 }
  0x75   :  { %1099 = vmatprep.subr.bf16.mxu1 %v1284_v0  ;;  %1171 = vmatprep.subr.bf16.mxu0 %v1284_v0 }
  0x78   :  { %1101 = vmatpush3.bf16.msra.mxu1 %v1100_v12  ;;  %1173 = vmatpush3.bf16.msra.mxu0 %v1365_v23  ;;  %v1112_v23 = vpack.c.bf16 %v1516_v56, %v1511_v42 }
  0x79   :  { %1102 = vmatprep.subr.bf16.mxu1 %v1284_v0  ;;  %1174 = vmatprep.subr.bf16.mxu0 %v1284_v0 }
  0x7c   :  { %1104 = vmatpush3.bf16.msra.mxu1 %v1103_v1  ;;  %1176 = vmatpush3.bf16.msra.mxu0 %v1383_v32 }
  0x7d   :  { %1105 = vmatprep.subr.bf16.mxu1 %v1284_v0  ;;  %1177 = vmatprep.subr.bf16.mxu0 %v1284_v0 }
  0x80   :  { %1107 = vmatpush3.bf16.msra.mxu1 %v1106_v13  ;;  %1179 = vmatpush3.bf16.msra.mxu0 %v1407_v41 }
  0x81   :  { %1108 = vmatprep.subr.bf16.mxu1 %v1284_v0  ;;  %1180 = vmatprep.subr.bf16.mxu0 %v1284_v0 }
  0x84   :  { %1110 = vmatpush3.bf16.msra.mxu1 %v1109_v18  ;;  %1182 = vmatpush3.bf16.msra.mxu0 %v1432_v53 }
  0x85   :  { %1111 = vmatprep.subr.bf16.mxu1 %v1284_v0  ;;  %1183 = vmatprep.subr.bf16.mxu0 %v1284_v0 }
  0x88   :  { %1113 = vmatpush3.bf16.msra.mxu1 %v1112_v23  ;;  %1185 = vmatpush3.bf16.msra.mxu0 %v1453_v63 }
  0x8b   :  { %935 = vmatmul.mubr.f32.vlgmr.msra.gmra.mrb[0].mxu1 %v1399_v40  ;;  %1040 = vmatmul.mubr.f32.vlgmr.msra.gmra.mrb[0].mxu0 %v1377_v30 }
 0x15e   :  { %v407_v32 = vpop.f32.mrb[0].mxu1  ;;  %v702_v37 = vpop.f32.mrb[0].mxu0 }
 0x15f   :  { %v1186_v38 = vadd.f32 %v729_v31, %v407_v32  ;;  %v936_v41 = vpop.f32.mrb[1].mxu1  ;;  %v1041_v47 = vpop.f32.mrb[1].mxu0 }
 0x161   :  { %v1187_v48 = vadd.f32 %v1186_v38, %v702_v37 }
 0x163   :  { %v706_v53 = vsub.f32 0.0, %v1187_v48 }
 0x165   :  { %v707_v57 = vmul.f32 1.442695, %v706_v53 }
 0x167   :  { %1204 = vpow2.f32 %v707_v57 }
 0x171   :  { %v1205_v0 = vpop.eup %1204 }
 0x172   :  { %v709_v58 = vadd.f32 1.0, %v1205_v0 }
 0x174   :  { %1206 = vrcp.f32 %v709_v58 }
 0x17e   :  { %v1207_v40 = vpop.eup %1206 }
 0x17f   :  { %v711_v30 = vmul.f32 %v1207_v40, %v1187_v48 }
 0x181   :  { %712 = vst [vmem:[#allocation7] sm:$0xff] %v711_v30 }
 0x182   :  { %1263 = shalt.err (!%p1260_p6)
}
 0x183   :  { %s1264_s15 = scalar_lea.hbm %s1604_s3, 128 }
 0x184   :  { %p1265_p7 = scmp.ne.s32.totalorder %s1604_s3, %s1264_s15  ;;  %p1268_p8 = scmp.lt.u32.totalorder %s1264_s15, %s1604_s3 }
 0x186   :  { %p1270_p9 = pnand %p1268_p8, %p1265_p7 }
 0x188   :  { %1273 = shalt.err (!%p1270_p9)
}
 0x189   :  { %722 = dma.vmem_to_hbm [thread:$0]  %s720_s12, 128, %s1604_s3, [#allocation4]  }
 0x18a   :  { %1278 = dma.done.wait [#allocation4], 128  }
 0x18b   :  { %1279 = vsyncadd [#allocation4], 4294967168 }
 0x18c   :  { %726 = vsyncpa [#allocation3], 1 }
 0x18d   :  { %727 = vsyncpa [#allocation6], 1 }
 0x18e   :  { %728 = vsyncpa [#allocation4], 1 }

</bundles_post_ra>
